<compile_context>
chip_gen: v6e
topology: v6e:2x2x1
jax: 0.10.0
libtpu: 0.0.40
codegen_flags: <defaults>
</compile_context>

<pallas_src>
import functools

import jax
import jax.numpy as jnp
from jax import lax
from jax.experimental import pallas as pl
from jax.experimental.pallas import tpu as pltpu


def _round_up(n, m):
    return ((n + m - 1) // m) * m


# Per-TensorCore VMEM capacity. Query once; fall back to the smallest current
# generation (v7x: 64 MiB/TC) so we never over-request.
try:
    _VMEM_CAP = int(pltpu.get_tpu_info().vmem_capacity_bytes)
except Exception:  # pragma: no cover — query unavailable
    _VMEM_CAP = 64 * 2**20
_VMEM_SOFT = (3 * _VMEM_CAP) // 4       # hard cap for vmem_limit_bytes (<=75%)
_VMEM_BUDGET = (11 * _VMEM_CAP) // 20   # ~55% of capacity: tile-sizing target


# --------------------------------------------------------------------------
# Pass 1: x1 = x @ W^T  (W pre-transposed -> plain MXU dot; bias cancels under
#         training-mode BN so it is never loaded), plus per-feature sum and
#         sum-of-squares accumulated over the batch grid axis.
# grid = (n_split, n_j, n_i_per); the last (batch) axis is the reduction axis.
# --------------------------------------------------------------------------
def _linear_stats_kernel(x_ref, wt_ref, x1_ref, stats_ref, *,
                         block_b, n_i_per, n_valid):
    s = pl.program_id(0)     # partial-stats split index (v7x core parallelism)
    i = pl.program_id(2)     # batch-tile index within the split (reduction)

    x1 = jnp.dot(x_ref[...], wt_ref[...], preferred_element_type=jnp.float32)
    # Store (possibly bf16) AFTER computing the stats input from the fp32 value.
    x1_ref[...] = x1.astype(x1_ref.dtype)

    @pl.when(i == 0)
    def _init():
        stats_ref[...] = jnp.zeros_like(stats_ref)

    def _accum(vals):
        stats_ref[0:1, :] += jnp.sum(vals, axis=0, keepdims=True)
        stats_ref[1:2, :] += jnp.sum(vals * vals, axis=0, keepdims=True)

    if n_valid is None:                       # no batch padding at all (static)
        _accum(x1)
    else:
        row0 = (s * n_i_per + i) * block_b
        has_pad = row0 + block_b > n_valid

        @pl.when(has_pad)                     # only tiles containing pad rows
        def _masked():
            rows = row0 + lax.broadcasted_iota(jnp.int32, (block_b, 1), 0)
            _accum(jnp.where(rows < n_valid, x1, 0.0))

        @pl.when(jnp.logical_not(has_pad))
        def _unmasked():
            _accum(x1)


# --------------------------------------------------------------------------
# Pass 2: out = x * sigmoid(x1 * scale + shift)
#         (scale/shift fold mean, rstd, gamma, beta — computed in the wrapper)
# --------------------------------------------------------------------------
def _gate_kernel(x_ref, x1_ref, scale_ref, shift_ref, o_ref):
    gate = jax.nn.sigmoid(x1_ref[...].astype(jnp.float32) * scale_ref[...]
                          + shift_ref[...])
    o_ref[...] = (x_ref[...].astype(jnp.float32) * gate).astype(o_ref.dtype)


@functools.partial(jax.jit, static_argnames=("mxu_dtype", "x1_dtype",
                                             "block_b", "block_n", "eps"))
def context_gating(x, w, b, gamma, beta, *, mxu_dtype=None, x1_dtype=None,
                   block_b=None, block_n=None, eps=1e-5):
    """Context_Gating forward (training-mode BatchNorm).

    x: (B, D); w: (D, D) PyTorch Linear layout (out, in); b/gamma/beta: (D,).
    Note: under training-mode BatchNorm the Linear bias cancels exactly out of
    the output, so `b` is accepted for API parity but never used.
    """
    del b
    B, D = x.shape
    f32 = jnp.float32

    op_dtype = jnp.dtype(mxu_dtype) if mxu_dtype is not None else x.dtype
    x1_store = jnp.dtype(x1_dtype) if x1_dtype is not None else op_dtype
    op_isz = op_dtype.itemsize
    x1_isz = x1_store.itemsize
    out_isz = x.dtype.itemsize

    # ---- tile sizes (lane-dense features; bf16-pack-friendly batch tiles) ----
    D_pad = _round_up(D, 128)

    if block_b is None:
        block_b = min(_round_up(B, 16), 512)
    assert block_b % 8 == 0

    # Keep the whole (D_pad, D_pad) weight resident when it comfortably fits
    # VMEM -> n_j == 1 and x is streamed from HBM exactly once.
    if block_n is None:
        if 2 * D_pad * D_pad * op_isz <= _VMEM_BUDGET // 2:
            block_n = D_pad
        else:
            block_n = 256 if D_pad % 256 == 0 else 128
    block_n = min(block_n, D_pad)
    assert block_n % 128 == 0 and D_pad % block_n == 0
    n_j = D_pad // block_n

    def _pass1_bytes(bb, bn):
        # Pallas double-buffers every BlockSpec'd array.
        return 2 * (bb * D_pad * op_isz        # x row tile
                    + D_pad * bn * op_isz      # W slab (resident across batch)
                    + bb * bn * x1_isz         # x1 out tile
                    + 2 * bn * 4)              # stats accumulator block

    # Shrink the batch tile (then the weight slab) only if the budget requires.
    while _pass1_bytes(block_b, block_n) > _VMEM_BUDGET and block_b >= 32:
        block_b //= 2
    while _pass1_bytes(block_b, block_n) > _VMEM_BUDGET and block_n >= 256:
        block_n //= 2
        n_j = D_pad // block_n

    # Split the batch reduction into 2 partial-stats streams when there is no
    # other parallel grid axis, so v7x's second TensorCore has pass-1 work.
    n_i0 = _round_up(B, block_b) // block_b
    n_split = 2 if (n_j == 1 and n_i0 >= 2) else 1

    B_pad = _round_up(B, block_b * n_split)
    n_i_per = B_pad // (block_b * n_split)

    # ---- pad to tile-friendly shapes (pad rows are masked out of BN stats) ---
    x_pad = jnp.pad(x, ((0, B_pad - B), (0, D_pad - D)))
    wt_pad = jnp.pad(w.T, ((0, D_pad - D), (0, D_pad - D)))   # (D_in, D_out), transposed once
    g_pad = jnp.pad(gamma.astype(f32), (0, D_pad - D)).reshape(1, D_pad)
    be_pad = jnp.pad(beta.astype(f32), (0, D_pad - D)).reshape(1, D_pad)

    x_mxu = x_pad.astype(op_dtype)
    wt_mxu = wt_pad.astype(op_dtype)

    # ---- pass 1: tiled linear + full-batch per-feature statistics ------------
    p1_bytes = _pass1_bytes(block_b, block_n)
    vmem1 = int(min(_VMEM_SOFT, max(p1_bytes + p1_bytes // 2, 16 * 2**20)))

    x1_pad, stats = pl.pallas_call(
        functools.partial(_linear_stats_kernel, block_b=block_b,
                          n_i_per=n_i_per,
                          n_valid=None if B == B_pad else B),
        grid=(n_split, n_j, n_i_per),
        in_specs=[
            pl.BlockSpec((block_b, D_pad), lambda s, j, i: (s * n_i_per + i, 0)),
            pl.BlockSpec((D_pad, block_n), lambda s, j, i: (0, j)),   # W resident
        ],
        out_specs=[
            pl.BlockSpec((block_b, block_n), lambda s, j, i: (s * n_i_per + i, j)),
            pl.BlockSpec((2, block_n), lambda s, j, i: (0, s * n_j + j)),
        ],
        out_shape=[
            jax.ShapeDtypeStruct((B_pad, D_pad), x1_store),          # x1 (bf16/fp32)
            jax.ShapeDtypeStruct((2, n_split * D_pad), f32),         # [sum; sumsq]
        ],
        compiler_params=pltpu.CompilerParams(
            dimension_semantics=("parallel", "parallel", "arbitrary"),
            vmem_limit_bytes=vmem1),
    )(x_mxu, wt_mxu)

    # ---- fold BN (batch mean, biased var) into per-feature scale / shift -----
    if n_split > 1:
        stats = stats.reshape(2, n_split, D_pad).sum(axis=1)
    mean = stats[0:1] / B
    var = jnp.maximum(stats[1:2] / B - mean * mean, 0.0)
    rstd = lax.rsqrt(var + eps)
    scale = g_pad * rstd                       # (1, D_pad)
    shift = be_pad - mean * scale              # (1, D_pad); dropped bias cancels here

    # ---- pass 2: elementwise normalize + GLU gate, lane-dense full-D slabs ---
    block_b2 = block_b

    def _pass2_bytes(bb):
        return 2 * (bb * D_pad * (out_isz + x1_isz + out_isz) + 2 * D_pad * 4)

    while (_pass2_bytes(block_b2) > _VMEM_BUDGET and block_b2 % 2 == 0
           and (block_b2 // 2) % 8 == 0 and B_pad % (block_b2 // 2) == 0):
        block_b2 //= 2
    n_i2 = B_pad // block_b2

    p2_bytes = _pass2_bytes(block_b2)
    vmem2 = int(min(_VMEM_SOFT, max(p2_bytes + p2_bytes // 2, 16 * 2**20)))

    out_pad = pl.pallas_call(
        _gate_kernel,
        grid=(n_i2,),
        in_specs=[
            pl.BlockSpec((block_b2, D_pad), lambda i: (i, 0)),   # x
            pl.BlockSpec((block_b2, D_pad), lambda i: (i, 0)),   # x1
            pl.BlockSpec((1, D_pad), lambda i: (0, 0)),          # scale
            pl.BlockSpec((1, D_pad), lambda i: (0, 0)),          # shift
        ],
        out_specs=pl.BlockSpec((block_b2, D_pad), lambda i: (i, 0)),
        out_shape=jax.ShapeDtypeStruct((B_pad, D_pad), x.dtype),
        compiler_params=pltpu.CompilerParams(
            dimension_semantics=("parallel",),
            vmem_limit_bytes=vmem2),
    )(x_pad, x1_pad, scale, shift)

    return out_pad[:B, :D]


# --------------------------------------------------------------------------
# Pure-JAX reference (PyTorch forward, training-mode BN)
# --------------------------------------------------------------------------
def _reference(x, w, b, gamma, beta, eps=1e-5):
    x1 = jnp.dot(x, w.T, precision=lax.Precision.HIGHEST) + b
    mean = jnp.mean(x1, axis=0, keepdims=True)
    var = jnp.mean((x1 - mean) ** 2, axis=0, keepdims=True)
    x1 = (x1 - mean) / jnp.sqrt(var + eps)
    x1 = x1 * gamma + beta
    return x * jax.nn.sigmoid(x1)


def _make_inputs(key, B, D):
    kx, kw, kb, kg, kbe = jax.random.split(key, 5)
    x = jax.random.normal(kx, (B, D), dtype=jnp.float32)
    bound = 1.0 / (D ** 0.5)                   # PyTorch-like Linear init range
    w = jax.random.uniform(kw, (D, D), minval=-bound, maxval=bound,
                           dtype=jnp.float32)
    b = jax.random.uniform(kb, (D,), minval=-bound, maxval=bound,
                           dtype=jnp.float32)
    gamma = 1.0 + 0.1 * jax.random.normal(kg, (D,), dtype=jnp.float32)
    beta = 0.1 * jax.random.normal(kbe, (D,), dtype=jnp.float32)
    return x, w, b, gamma, beta


if __name__ == "__main__":
    key = jax.random.PRNGKey(0)
    k1, k2 = jax.random.split(key)

    # -- test 1: small fp32 path, tight tolerance ------------------------------
    B, D = 8, 32
    x, w, b, gamma, beta = _make_inputs(k1, B, D)
    ref = _reference(x, w, b, gamma, beta)
    out = jax.block_until_ready(context_gating(x, w, b, gamma, beta))
    assert out.shape == (B, D) and out.dtype == x.dtype
    assert jnp.allclose(out, ref, atol=2e-5, rtol=2e-5), "fp32 mismatch vs reference"

    # -- test 2: exercises the split-batch partial-stats path (n_split=2) ------
    B2, D2 = 64, 128
    x2, w2, b2, gamma2, beta2 = _make_inputs(k2, B2, D2)
    ref2 = _reference(x2, w2, b2, gamma2, beta2)
    out2 = jax.block_until_ready(
        context_gating(x2, w2, b2, gamma2, beta2, block_b=16))
    assert out2.shape == (B2, D2) and out2.dtype == x2.dtype
    assert jnp.allclose(out2, ref2, atol=1e-4, rtol=1e-4), "split-stats mismatch"

    # -- test 3: bf16 MXU operands + bf16 x1 intermediate (loose tolerance) ----
    out_bf = jax.block_until_ready(
        context_gating(x, w, b, gamma, beta, mxu_dtype=jnp.bfloat16))
    assert out_bf.shape == (B, D) and out_bf.dtype == x.dtype
    assert bool(jnp.isfinite(out_bf).all())
    assert jnp.allclose(out_bf, ref, atol=0.2, rtol=0.0), "bf16 path grossly wrong"

    print("KERNEL_OK")
</pallas_src>

<mosaic_0001>
module attributes {stable_mosaic.version = 11 : i64} {
  func.func @_linear_stats_kernel(%arg0: i32, %arg1: i32, %arg2: i32, %arg3: memref<16x128xf32, #tpu.memory_space<vmem>>, %arg4: memref<128x128xf32, #tpu.memory_space<vmem>>, %arg5: memref<16x128xf32, #tpu.memory_space<vmem>>, %arg6: memref<2x128xf32, #tpu.memory_space<vmem>>) attributes {dimension_semantics = [#tpu.dimension_semantics<parallel>, #tpu.dimension_semantics<parallel>, #tpu.dimension_semantics<arbitrary>], iteration_bounds = array<i64: 1, 1, 1>, scalar_prefetch = 0 : i64, scratch_operands = 0 : i64, tpu.core_type = #tpu.core_type<tc>, window_params = [{transform_indices = @transform_0, window_bounds = array<i64: 16, 128>}, {transform_indices = @transform_1, window_bounds = array<i64: 128, 128>}, {transform_indices = @transform_2, window_bounds = array<i64: 16, 128>}, {transform_indices = @transform_3, window_bounds = array<i64: 2, 128>}]} {
    %c0 = arith.constant 0 : index
    %c0_0 = arith.constant 0 : index
    %0 = vector.load %arg3[%c0, %c0_0] : memref<16x128xf32, #tpu.memory_space<vmem>>, vector<16x128xf32>
    %c0_1 = arith.constant 0 : index
    %c0_2 = arith.constant 0 : index
    %1 = vector.load %arg4[%c0_1, %c0_2] : memref<128x128xf32, #tpu.memory_space<vmem>>, vector<128x128xf32>
    %cst = arith.constant dense<0.000000e+00> : vector<16x128xf32>
    %2 = tpu.matmul %0, %1, %cst {dimension_numbers = #tpu.dot_dimension_numbers<[1], [0], [0], [1], [0, 0, 1, 1], [], []>} : vector<16x128xf32>, vector<128x128xf32>, vector<16x128xf32> -> vector<16x128xf32>
    %c0_3 = arith.constant 0 : index
    %c0_4 = arith.constant 0 : index
    %3 = vector.load %arg5[%c0_3, %c0_4] : memref<16x128xf32, #tpu.memory_space<vmem>>, vector<16x128xf32>
    tpu.vector_store %arg5[%c0_3, %c0_4], %2 {strides = array<i32>} : memref<16x128xf32, #tpu.memory_space<vmem>>, vector<16x128xf32>,
    %c0_i32 = arith.constant 0 : i32
    %4 = arith.cmpi eq, %arg2, %c0_i32 : i32
    %5 = arith.extui %4 : i1 to i32
    %c0_i32_5 = arith.constant 0 : i32
    %6 = arith.cmpi ne, %5, %c0_i32_5 : i32
    scf.if %6 {
      %cst_9 = arith.constant 0.000000e+00 : f32
      %17 = vector.broadcast %cst_9 : f32 to vector<2x128xf32>
      %c0_10 = arith.constant 0 : index
      %c0_11 = arith.constant 0 : index
      %18 = vector.load %arg6[%c0_10, %c0_11] : memref<2x128xf32, #tpu.memory_space<vmem>>, vector<2x128xf32>
      tpu.vector_store %arg6[%c0_10, %c0_11], %17 {strides = array<i32>} : memref<2x128xf32, #tpu.memory_space<vmem>>, vector<2x128xf32>,
    } else {
    }
    %c1_i32 = arith.constant 1 : i32
    %7 = arith.muli %arg0, %c1_i32 : i32
    %8 = arith.addi %7, %arg2 : i32
    %c16_i32 = arith.constant 16 : i32
    %9 = arith.muli %8, %c16_i32 : i32
    %c16_i32_6 = arith.constant 16 : i32
    %10 = arith.addi %9, %c16_i32_6 : i32
    %c8_i32 = arith.constant 8 : i32
    %11 = arith.cmpi sgt, %10, %c8_i32 : i32
    %12 = arith.extui %11 : i1 to i32
    %c0_i32_7 = arith.constant 0 : i32
    %13 = arith.cmpi ne, %12, %c0_i32_7 : i32
    scf.if %13 {
      %17 = tpu.iota {dimensions = array<i32: 0>} : vector<16x1xi32>
      %18 = vector.broadcast %9 : i32 to vector<16x1xi32>
      %19 = arith.addi %18, %17 : vector<16x1xi32>
      %c8_i32_9 = arith.constant 8 : i32
      %20 = vector.broadcast %c8_i32_9 : i32 to vector<16x1xi32>
      %21 = arith.cmpi slt, %19, %20 : vector<16x1xi32>
      %cst_10 = arith.constant 0.000000e+00 : f32
      %22 = vector.shape_cast %21 : vector<16x1xi1> to vector<16x1xi1>
      %23 = vector.broadcast %22 : vector<16x1xi1> to vector<16x128xi1>
      %24 = vector.broadcast %cst_10 : f32 to vector<16x128xf32>
      %25 = arith.select %23, %2, %24 : vector<16x128xi1>, vector<16x128xf32>
      %c0_11 = arith.constant 0 : index
      %c0_12 = arith.constant 0 : index
      %26 = vector.load %arg6[%c0_11, %c0_12] : memref<2x128xf32, #tpu.memory_space<vmem>>, vector<1x128xf32>
      %cst_13 = arith.constant dense<0.000000e+00> : vector<128xf32>
      %27 = vector.multi_reduction <add>, %25, %cst_13 [0] : vector<16x128xf32> to vector<128xf32>
      %28 = vector.shape_cast %27 : vector<128xf32> to vector<1x128xf32>
      %29 = arith.addf %26, %28 : vector<1x128xf32>
      %c0_14 = arith.constant 0 : index
      %c0_15 = arith.constant 0 : index
      %30 = vector.load %arg6[%c0_14, %c0_15] : memref<2x128xf32, #tpu.memory_space<vmem>>, vector<1x128xf32>
      tpu.vector_store %arg6[%c0_14, %c0_15], %29 {strides = array<i32>} : memref<2x128xf32, #tpu.memory_space<vmem>>, vector<1x128xf32>,
      %c1 = arith.constant 1 : index
      %c0_16 = arith.constant 0 : index
      %31 = vector.load %arg6[%c1, %c0_16] : memref<2x128xf32, #tpu.memory_space<vmem>>, vector<1x128xf32>
      %32 = arith.mulf %25, %25 : vector<16x128xf32>
      %cst_17 = arith.constant dense<0.000000e+00> : vector<128xf32>
      %33 = vector.multi_reduction <add>, %32, %cst_17 [0] : vector<16x128xf32> to vector<128xf32>
      %34 = vector.shape_cast %33 : vector<128xf32> to vector<1x128xf32>
      %35 = arith.addf %31, %34 : vector<1x128xf32>
      %c1_18 = arith.constant 1 : index
      %c0_19 = arith.constant 0 : index
      %36 = vector.load %arg6[%c1_18, %c0_19] : memref<2x128xf32, #tpu.memory_space<vmem>>, vector<1x128xf32>
      tpu.vector_store %arg6[%c1_18, %c0_19], %35 {strides = array<i32>} : memref<2x128xf32, #tpu.memory_space<vmem>>, vector<1x128xf32>,
    } else {
    }
    %true = arith.constant true
    %14 = arith.xori %11, %true : i1
    %15 = arith.extui %14 : i1 to i32
    %c0_i32_8 = arith.constant 0 : i32
    %16 = arith.cmpi ne, %15, %c0_i32_8 : i32
    scf.if %16 {
      %c0_9 = arith.constant 0 : index
      %c0_10 = arith.constant 0 : index
      %17 = vector.load %arg6[%c0_9, %c0_10] : memref<2x128xf32, #tpu.memory_space<vmem>>, vector<1x128xf32>
      %cst_11 = arith.constant dense<0.000000e+00> : vector<128xf32>
      %18 = vector.multi_reduction <add>, %2, %cst_11 [0] : vector<16x128xf32> to vector<128xf32>
      %19 = vector.shape_cast %18 : vector<128xf32> to vector<1x128xf32>
      %20 = arith.addf %17, %19 : vector<1x128xf32>
      %c0_12 = arith.constant 0 : index
      %c0_13 = arith.constant 0 : index
      %21 = vector.load %arg6[%c0_12, %c0_13] : memref<2x128xf32, #tpu.memory_space<vmem>>, vector<1x128xf32>
      tpu.vector_store %arg6[%c0_12, %c0_13], %20 {strides = array<i32>} : memref<2x128xf32, #tpu.memory_space<vmem>>, vector<1x128xf32>,
      %c1 = arith.constant 1 : index
      %c0_14 = arith.constant 0 : index
      %22 = vector.load %arg6[%c1, %c0_14] : memref<2x128xf32, #tpu.memory_space<vmem>>, vector<1x128xf32>
      %23 = arith.mulf %2, %2 : vector<16x128xf32>
      %cst_15 = arith.constant dense<0.000000e+00> : vector<128xf32>
      %24 = vector.multi_reduction <add>, %23, %cst_15 [0] : vector<16x128xf32> to vector<128xf32>
      %25 = vector.shape_cast %24 : vector<128xf32> to vector<1x128xf32>
      %26 = arith.addf %22, %25 : vector<1x128xf32>
      %c1_16 = arith.constant 1 : index
      %c0_17 = arith.constant 0 : index
      %27 = vector.load %arg6[%c1_16, %c0_17] : memref<2x128xf32, #tpu.memory_space<vmem>>, vector<1x128xf32>
      tpu.vector_store %arg6[%c1_16, %c0_17], %26 {strides = array<i32>} : memref<2x128xf32, #tpu.memory_space<vmem>>, vector<1x128xf32>,
    } else {
    }
    return
  }
  func.func @transform_0(%arg0: i32, %arg1: i32, %arg2: i32) -> (i32, i32) {
    %c1_i32 = arith.constant 1 : i32
    %0 = arith.muli %arg0, %c1_i32 : i32
    %1 = arith.addi %0, %arg2 : i32
    %c0_i32 = arith.constant 0 : i32
    %c0_i32_0 = arith.constant 0 : i32
    return %1, %c0_i32 : i32, i32
  }
  func.func @transform_1(%arg0: i32, %arg1: i32, %arg2: i32) -> (i32, i32) {
    %c0_i32 = arith.constant 0 : i32
    %c0_i32_0 = arith.constant 0 : i32
    return %c0_i32, %arg1 : i32, i32
  }
  func.func @transform_2(%arg0: i32, %arg1: i32, %arg2: i32) -> (i32, i32) {
    %c1_i32 = arith.constant 1 : i32
    %0 = arith.muli %arg0, %c1_i32 : i32
    %1 = arith.addi %0, %arg2 : i32
    %c0_i32 = arith.constant 0 : i32
    return %1, %arg1 : i32, i32
  }
  func.func @transform_3(%arg0: i32, %arg1: i32, %arg2: i32) -> (i32, i32) {
    %c1_i32 = arith.constant 1 : i32
    %0 = arith.muli %arg0, %c1_i32 : i32
    %1 = arith.addi %0, %arg1 : i32
    %c0_i32 = arith.constant 0 : i32
    %c0_i32_0 = arith.constant 0 : i32
    return %c0_i32, %1 : i32, i32
  }
}

module attributes {stable_mosaic.version = 11 : i64} {
  func.func @_gate_kernel(%arg0: i32, %arg1: memref<16x128xf32, #tpu.memory_space<vmem>>, %arg2: memref<16x128xf32, #tpu.memory_space<vmem>>, %arg3: memref<1x128xf32, #tpu.memory_space<vmem>>, %arg4: memref<1x128xf32, #tpu.memory_space<vmem>>, %arg5: memref<16x128xf32, #tpu.memory_space<vmem>>) attributes {dimension_semantics = [#tpu.dimension_semantics<parallel>], iteration_bounds = array<i64: 1>, scalar_prefetch = 0 : i64, scratch_operands = 0 : i64, tpu.core_type = #tpu.core_type<tc>, window_params = [{transform_indices = @transform_0, window_bounds = array<i64: 16, 128>}, {transform_indices = @transform_1, window_bounds = array<i64: 16, 128>}, {pipeline_mode = #tpu.pipeline_mode<synchronous>, transform_indices = @transform_2, window_bounds = array<i64: 1, 128>}, {pipeline_mode = #tpu.pipeline_mode<synchronous>, transform_indices = @transform_3, window_bounds = array<i64: 1, 128>}, {transform_indices = @transform_4, window_bounds = array<i64: 16, 128>}]} {
    %c0 = arith.constant 0 : index
    %c0_0 = arith.constant 0 : index
    %0 = vector.load %arg2[%c0, %c0_0] : memref<16x128xf32, #tpu.memory_space<vmem>>, vector<16x128xf32>
    %c0_1 = arith.constant 0 : index
    %c0_2 = arith.constant 0 : index
    %1 = vector.load %arg3[%c0_1, %c0_2] : memref<1x128xf32, #tpu.memory_space<vmem>>, vector<1x128xf32>
    %2 = vector.broadcast %1 : vector<1x128xf32> to vector<16x128xf32>
    %3 = arith.mulf %0, %2 : vector<16x128xf32>
    %c0_3 = arith.constant 0 : index
    %c0_4 = arith.constant 0 : index
    %4 = vector.load %arg4[%c0_3, %c0_4] : memref<1x128xf32, #tpu.memory_space<vmem>>, vector<1x128xf32>
    %5 = vector.broadcast %4 : vector<1x128xf32> to vector<16x128xf32>
    %6 = arith.addf %3, %5 : vector<16x128xf32>
    %7 = arith.negf %6 : vector<16x128xf32>
    %8 = math.exp %7 : vector<16x128xf32>
    %cst = arith.constant 1.000000e+00 : f32
    %9 = vector.broadcast %cst : f32 to vector<16x128xf32>
    %10 = arith.addf %9, %8 : vector<16x128xf32>
    %11 = arith.divf %9, %10 : vector<16x128xf32>
    %c0_5 = arith.constant 0 : index
    %c0_6 = arith.constant 0 : index
    %12 = vector.load %arg1[%c0_5, %c0_6] : memref<16x128xf32, #tpu.memory_space<vmem>>, vector<16x128xf32>
    %13 = arith.mulf %12, %11 : vector<16x128xf32>
    %c0_7 = arith.constant 0 : index
    %c0_8 = arith.constant 0 : index
    %14 = vector.load %arg5[%c0_7, %c0_8] : memref<16x128xf32, #tpu.memory_space<vmem>>, vector<16x128xf32>
    tpu.vector_store %arg5[%c0_7, %c0_8], %13 {strides = array<i32>} : memref<16x128xf32, #tpu.memory_space<vmem>>, vector<16x128xf32>,
    return
  }
  func.func @transform_0(%arg0: i32) -> (i32, i32) {
    %c0_i32 = arith.constant 0 : i32
    %c0_i32_0 = arith.constant 0 : i32
    return %arg0, %c0_i32 : i32, i32
  }
  func.func @transform_1(%arg0: i32) -> (i32, i32) {
    %c0_i32 = arith.constant 0 : i32
    %c0_i32_0 = arith.constant 0 : i32
    return %arg0, %c0_i32 : i32, i32
  }
  func.func @transform_2(%arg0: i32) -> (i32, i32) {
    %c0_i32 = arith.constant 0 : i32
    %c0_i32_0 = arith.constant 0 : i32
    %c0_i32_1 = arith.constant 0 : i32
    return %c0_i32, %c0_i32_0 : i32, i32
  }
  func.func @transform_3(%arg0: i32) -> (i32, i32) {
    %c0_i32 = arith.constant 0 : i32
    %c0_i32_0 = arith.constant 0 : i32
    %c0_i32_1 = arith.constant 0 : i32
    return %c0_i32, %c0_i32_0 : i32, i32
  }
  func.func @transform_4(%arg0: i32) -> (i32, i32) {
    %c0_i32 = arith.constant 0 : i32
    %c0_i32_0 = arith.constant 0 : i32
    return %arg0, %c0_i32 : i32, i32
  }
}

</mosaic_0001>

<bundles_post_ra>
// kernel: context_gating.3
= control target key start
LH: loop header
LB: loop body
LE: loop exit
PB: predicated region body
PF: predicated region fallthrough
CT: control target
= control target key end

     0   :  { %s120_s1 = inlined_call_operand.vmem [shape: f32[16,128], index: 1, kind: input, shape index: {}]   ;;  %s121_s2 = inlined_call_operand.vmem [shape: f32[1,128], index: 2, kind: input, shape index: {}]   ;;  %s122_s3 = inlined_call_operand.vmem [shape: f32[1,128], index: 3, kind: input, shape index: {}]   ;;  %s123_s0 = inlined_call_operand.vmem [shape: f32[16,128], index: 0, kind: input, shape index: {}]   ;;  %s124_s4 = inlined_call_operand.vmem [shape: f32[16,128], index: 4, kind: output, shape index: {}]  }
   0x1   :  { %v17_v0 = vld [vmem:[%s120_s1] sm:$0xff]  ;;  %v18_v4 = vld [vmem:[%s120_s1 + $0x8] sm:$0xff] }
   0x2   :  { %v59_v1 = vld [vmem:[%s121_s2] ss:$0 sm:$0xff]  ;;  %v50_v15 = vld [vmem:[%s123_s0 + $0x8] sm:$0xff] }
   0x3   :  { %v60_v2 = vld [vmem:[%s122_s3] ss:$0 sm:$0xff]  ;;  %v26_v3 = vmul.f32 %v59_v1, %v17_v0  ;;  %v27_v5 = vmul.f32 %v59_v1, %v18_v4 }
   0x4   :  { %v49_v14 = vld [vmem:[%s123_s0] sm:$0xff] }
   0x5   :  { %v35_v6 = vadd.f32 %v60_v2, %v26_v3  ;;  %v36_v7 = vadd.f32 %v60_v2, %v27_v5 }
   0x7   :  { %v61_v8 = vmul.f32 -1.442695, %v35_v6  ;;  %v62_v9 = vmul.f32 -1.442695, %v36_v7 }
   0x9   :  { %63 = vpow2.f32 %v61_v8 }
   0xa   :  { %65 = vpow2.f32 %v62_v9 }
  0x16   :  { %v64_v10 = vpop.eup %63 }
  0x17   :  { %v66_v11 = vpop.eup %65  ;;  %v43_v12 = vadd.f32 1.0, %v64_v10 }
  0x18   :  { %v44_v13 = vadd.f32 1.0, %v66_v11 }
  0x19   :  { %67 = vrcp.f32 %v43_v12 }
  0x1a   :  { %69 = vrcp.f32 %v44_v13 }
  0x26   :  { %v68_v16 = vpop.eup %67 }
  0x27   :  { %v70_v17 = vpop.eup %69  ;;  %v51_v18 = vmul.f32 %v68_v16, %v49_v14 }
  0x28   :  { %v52_v19 = vmul.f32 %v70_v17, %v50_v15 }
  0x29   :  { %53 = vst [vmem:[%s124_s4] sm:$0xff] %v51_v18 }
  0x2a   :  { %54 = vst [vmem:[%s124_s4 + $0x8] sm:$0xff] %v52_v19 }

// kernel: context_gating.2
= control target key start
LH: loop header
LB: loop body
LE: loop exit
PB: predicated region body
PF: predicated region fallthrough
CT: control target
= control target key end

     0   :  { %v338_v18 = vmov 0.0   ;;  %s434_s1 = inlined_call_operand.vmem [shape: f32[128,128], index: 1, kind: input, shape index: {}]   ;;  %s435_s0 = inlined_call_operand.vmem [shape: f32[16,128], index: 0, kind: input, shape index: {}]   ;;  %s436_s3 = inlined_call_operand.vmem [shape: f32[2,128], index: 3, kind: output, shape index: {1}]   ;;  %s437_s2 = inlined_call_operand.vmem [shape: f32[16,128], index: 2, kind: output, shape index: {0}]  }
   0x1   :  { %v77_v0 = vld [vmem:[%s434_s1 + $0x78] sm:$0xff]  ;;  %v76_v1 = vld [vmem:[%s434_s1 + $0x70] sm:$0xff]  ;;  %v75_v2 = vld [vmem:[%s434_s1 + $0x68] sm:$0xff]  ;;  %159 = vst [vmem:[%s436_s3] sm:$0x3] %v338_v18 }
   0x2   :  { %302 = vmatprep.subr.mxu0 %v77_v0  ;;  %v74_v3 = vld [vmem:[%s434_s1 + $0x60] sm:$0xff]  ;;  %v73_v5 = vld [vmem:[%s434_s1 + $0x58] sm:$0xff]  ;;  %v72_v6 = vld [vmem:[%s434_s1 + $0x50] sm:$0xff] }
   0x3   :  { %303 = vmatpush3.msra.mxu0 %v77_v0  ;;  %v60_v4 = vld [vmem:[%s435_s0] sm:$0xff]  ;;  %v71_v7 = vld [vmem:[%s434_s1 + $0x48] sm:$0xff]  ;;  %v69_v9 = vld [vmem:[%s434_s1 + $0x38] sm:$0xff] }
   0x4   :  { %304 = vmatprep.subr.mxu0 %v76_v1  ;;  %334 = vmatprep.mubr.f32.mxu0 %v60_v4  ;;  %v70_v8 = vld [vmem:[%s434_s1 + $0x40] sm:$0xff]  ;;  %v68_v10 = vld [vmem:[%s434_s1 + $0x30] sm:$0xff]  ;;  %v67_v11 = vld [vmem:[%s434_s1 + $0x28] sm:$0xff] }
   0x5   :  { %305 = vmatpush3.msra.mxu0 %v76_v1  ;;  %v66_v12 = vld [vmem:[%s434_s1 + $0x20] sm:$0xff]  ;;  %v65_v13 = vld [vmem:[%s434_s1 + $0x18] sm:$0xff]  ;;  %v64_v14 = vld [vmem:[%s434_s1 + $0x10] sm:$0xff] }
   0x6   :  { %306 = vmatprep.subr.mxu0 %v75_v2  ;;  %v63_v15 = vld [vmem:[%s434_s1 + $0x8] sm:$0xff]  ;;  %v62_v16 = vld [vmem:[%s434_s1] sm:$0xff] }
   0x7   :  { %307 = vmatpush3.msra.mxu0 %v75_v2  ;;  %v61_v17 = vld [vmem:[%s435_s0 + $0x8] sm:$0xff] }
   0x8   :  { %308 = vmatprep.subr.mxu0 %v74_v3  ;;  %v181_v31 = vld [vmem:[%s436_s3] sm:$0x1]  ;;  %v191_v34 = vld [vmem:[%s436_s3 + $0x1] sm:$0x1] }
   0x9   :  { %309 = vmatpush3.msra.mxu0 %v74_v3 }
   0xa   :  { %310 = vmatprep.subr.mxu0 %v73_v5 }
   0xb   :  { %311 = vmatpush3.msra.mxu0 %v73_v5 }
   0xc   :  { %312 = vmatprep.subr.mxu0 %v72_v6 }
   0xd   :  { %313 = vmatpush3.msra.mxu0 %v72_v6 }
   0xe   :  { %314 = vmatprep.subr.mxu0 %v71_v7 }
   0xf   :  { %315 = vmatpush3.msra.mxu0 %v71_v7 }
  0x10   :  { %316 = vmatprep.subr.mxu0 %v70_v8 }
  0x11   :  { %317 = vmatpush3.msra.mxu0 %v70_v8 }
  0x12   :  { %318 = vmatprep.subr.mxu0 %v69_v9 }
  0x13   :  { %319 = vmatpush3.msra.mxu0 %v69_v9 }
  0x14   :  { %320 = vmatprep.subr.mxu0 %v68_v10 }
  0x15   :  { %321 = vmatpush3.msra.mxu0 %v68_v10 }
  0x16   :  { %322 = vmatprep.subr.mxu0 %v67_v11 }
  0x17   :  { %323 = vmatpush3.msra.mxu0 %v67_v11 }
  0x18   :  { %324 = vmatprep.subr.mxu0 %v66_v12 }
  0x19   :  { %325 = vmatpush3.msra.mxu0 %v66_v12 }
  0x1a   :  { %326 = vmatprep.subr.mxu0 %v65_v13 }
  0x1b   :  { %327 = vmatpush3.msra.mxu0 %v65_v13 }
  0x1c   :  { %328 = vmatprep.subr.mxu0 %v64_v14 }
  0x1d   :  { %329 = vmatpush3.msra.mxu0 %v64_v14 }
  0x1e   :  { %330 = vmatprep.subr.mxu0 %v63_v15 }
  0x1f   :  { %331 = vmatpush3.msra.mxu0 %v63_v15 }
  0x20   :  { %332 = vmatprep.subr.mxu0 %v62_v16 }
  0x21   :  { %333 = vmatpush3.msra.mxu0 %v62_v16 }
  0x22   :  { %335 = vmatmul.mubr.f32.vlgmr.msra.gmra.mxu0 %v61_v17 }
  0xe2   :  { %v336_v19 = vpop.f32.mrf.mxu0 }
  0xe3   :  { %154 = vst [vmem:[%s437_s2 + $0x8] sm:$0xff] %v336_v19 }
  0xe4   :  { %v144_v20 = vpop.f32.mrf.mxu0 }
  0xe5   :  { %153 = vst [vmem:[%s437_s2] sm:$0xff] %v144_v20  ;;  %v183_v21 = vrot.slane %v144_v20, 4  ;;  %v192_v22 = vmul.f32 %v144_v20, %v144_v20 }
  0xe7   :  { %v184_v23 = vadd.f32 %v183_v21, %v144_v20  ;;  %v195_v24 = vrot.slane %v192_v22, 4 }
  0xe9   :  { %v185_v25 = vrot.slane %v184_v23, 2  ;;  %v196_v26 = vadd.f32 %v195_v24, %v192_v22 }
  0xeb   :  { %v186_v27 = vadd.f32 %v185_v25, %v184_v23  ;;  %v197_v28 = vrot.slane %v196_v26, 2 }
  0xed   :  { %v187_v29 = vrot.slane %v186_v27, 1  ;;  %v198_v30 = vadd.f32 %v197_v28, %v196_v26 }
  0xef   :  { %v188_v32 = vadd.f32 %v187_v29, %v186_v27  ;;  %v199_v33 = vrot.slane %v198_v30, 1 }
  0xf1   :  { %v189_v35 = vadd.f32 %v188_v32, %v181_v31  ;;  %v200_v36 = vadd.f32 %v199_v33, %v198_v30 }
  0xf3   :  { %190 = vst [vmem:[%s436_s3] sm:$0x1] %v189_v35  ;;  %v201_v37 = vadd.f32 %v200_v36, %v191_v34 }
  0xf5   :  { %202 = vst [vmem:[%s436_s3 + $0x1] sm:$0x1] %v201_v37 }

</bundles_post_ra>
